<compile_context>
chip_gen: v7x
topology: tpu7x:2x2x1
jax: 0.10.0
libtpu: 0.0.40
codegen_flags: <defaults>
</compile_context>

<pallas_src>
import functools
import math

import jax
import jax.numpy as jnp
from jax.experimental import pallas as pl
from jax.experimental.pallas import tpu as pltpu


F_PAD = 128   # all feature dims padded to one lane tile
G_PAD = 8     # graph (pooling) dim padded to one sublane tile


# ---------------------------------------------------------------------------
# Fused Pallas kernel: all SplineConv layers + pool + log_softmax
# ---------------------------------------------------------------------------
def _splinenet_kernel(x_ref, a_hbm_ref, wcat_ref, bias_ref, pmean_ref, selt_ref,
                      o_ref, a_vmem, *, num_layers, feat_pad, num_classes,
                      num_graphs):
    F = feat_pad

    # Single-buffered manual DMA of the O(N^2) adjacency (the largest operand).
    pltpu.sync_copy(a_hbm_ref, a_vmem)
    a0 = a_vmem[0]                       # [N, N] bf16, 1/deg (mean agg) folded in
    a1 = a_vmem[1]                       # [N, N] bf16

    x = x_ref[...]                       # [N, F] bf16
    out = None
    for l in range(num_layers):          # static unroll over layers
        # One [N,F]@[F,3F] dot produces both spline messages and the root term.
        xw = jnp.dot(x, wcat_ref[l], preferred_element_type=jnp.float32)  # [N,3F] f32
        m01 = xw[:, :2 * F].astype(jnp.bfloat16)   # single downcast of both messages
        # Chained f32 accumulation -- no sublane concat, no [2N,F] copy.
        out = (jnp.dot(a0, m01[:, :F], preferred_element_type=jnp.float32)
               + jnp.dot(a1, m01[:, F:], preferred_element_type=jnp.float32)
               + xw[:, 2 * F:] + bias_ref[l])                             # [N, F] f32
        if l < num_layers - 1:
            out = out * jax.nn.sigmoid(out)        # x * sigmoid(x), f32 epilogue
            x = out.astype(jnp.bfloat16)           # one activation cast per layer

    # ---- pooling epilogue, lane-dense on the full padded [N, F] block ------
    # global mean pool == one MXU dot with exact 1/cnt folded into pmean.
    mean_all = jnp.dot(pmean_ref[...], out,
                       preferred_element_type=jnp.float32)                # [G_pad, F]

    # global max pool: additive -1e30 mask per graph, reduce over nodes.
    # Empty graphs cannot occur with PyG batching; if they did, the max row
    # saturates at -1e30 but the final log_softmax stays finite.
    selt = selt_ref[...]                                                  # [N, G_pad]
    max_rows = []
    # TODO(synk): static unroll over graphs; for large G move pooling to a grid
    # axis / contiguous-segment formulation.
    for g in range(num_graphs):
        neg = (selt[:, g:g + 1] - 1.0) * 1e30                 # [N,1]: 0 or -1e30
        max_rows.append(jnp.max(out + neg, axis=0, keepdims=True))        # [1, F]
    max_all = jnp.concatenate(max_rows, axis=0)                           # [G, F]

    # tiny [G, 2C] head: slice to num_classes only here (padded cols are exact 0)
    cat = jnp.concatenate([max_all[:, :num_classes],
                           mean_all[:num_graphs, :num_classes]], axis=1)  # [G, 2C]

    # log_softmax over dim=1
    zmax = jnp.max(cat, axis=1, keepdims=True)
    z = cat - zmax
    lse = jnp.log(jnp.sum(jnp.exp(z), axis=1, keepdims=True))
    o_ref[...] = z - lse


def _full_spec(shape):
    return pl.BlockSpec(shape, lambda *_: (0,) * len(shape))


def _nbytes(a):
    return int(a.size) * int(a.dtype.itemsize)


# ---------------------------------------------------------------------------
# Glue: dense graph construction + parameter packing + forward
# ---------------------------------------------------------------------------
def build_dense_graph(edge_index, edge_attr, num_nodes, dtype=jnp.bfloat16):
    """Densify edges into A = stack([A0, A1]) with mean aggregation folded in.

    A_k[i, j] = (1/deg_i) * sum over edges j->i of basis_k(u_e),
    basis_0 = 1-u, basis_1 = u  (open B-spline, degree 1, kernel_size 2, dim 1).
    """
    src = edge_index[0]                  # source j
    dst = edge_index[1]                  # target i (messages j -> i)
    u = jnp.clip(edge_attr[:, 0], 0.0, 1.0)
    b0 = 1.0 - u
    b1 = u
    a0 = jnp.zeros((num_nodes, num_nodes), jnp.float32).at[dst, src].add(b0)
    a1 = jnp.zeros((num_nodes, num_nodes), jnp.float32).at[dst, src].add(b1)
    deg = jnp.zeros((num_nodes,), jnp.float32).at[dst].add(1.0)
    invdeg = jnp.where(deg > 0, 1.0 / deg, 0.0)[:, None]   # deg-0 node -> zero message
    a = jnp.stack([a0 * invdeg, a1 * invdeg], axis=0)      # [2, N, N]
    return a.astype(dtype)


def build_pool_mats(batch, num_graphs, num_nodes):
    """pmean[g, i] = (batch[i]==g) / count_g  (exact reciprocal, f32),
       selt[i, g]  = (batch[i]==g)            (one-hot, f32)."""
    g_pad = max(G_PAD, ((num_graphs + 7) // 8) * 8)
    onehot = (batch[:, None] == jnp.arange(num_graphs)[None, :]).astype(jnp.float32)
    cnt = jnp.sum(onehot, axis=0)                                    # [G]
    inv = jnp.where(cnt > 0, 1.0 / cnt, 0.0)
    pmean = jnp.zeros((g_pad, num_nodes), jnp.float32).at[:num_graphs, :].set(
        (onehot * inv).T)
    selt = jnp.zeros((num_nodes, g_pad), jnp.float32).at[:, :num_graphs].set(onehot)
    return pmean, selt


def init_spline_layer(key, in_c, out_c):
    """SplineConv(in_c, out_c, dim=1, kernel_size=2): spline weights [2, in, out],
    root weight [in, out], bias [out]. Xavier-uniform style init."""
    k0, k1, k2, k3 = jax.random.split(key, 4)
    limit = math.sqrt(6.0 / (in_c + out_c))
    w0 = jax.random.uniform(k0, (in_c, out_c), jnp.float32, -limit, limit)
    w1 = jax.random.uniform(k1, (in_c, out_c), jnp.float32, -limit, limit)
    wr = jax.random.uniform(k2, (in_c, out_c), jnp.float32, -limit, limit)
    b = jax.random.uniform(k3, (1, out_c), jnp.float32, -0.1, 0.1)
    return (w0, w1, wr, b)


def init_splinenet_params(key, num_features, width, num_classes):
    dims = [num_features] + list(width) + [num_classes]
    keys = jax.random.split(key, len(dims) - 1)
    return [init_spline_layer(k, dims[i], dims[i + 1]) for i, k in enumerate(keys)]


def pack_params(params, f_pad=F_PAD, dtype=jnp.bfloat16):
    """Zero-pad every layer to [f_pad, f_pad], concat W0|W1|Wr on lanes, stack layers."""
    wcats, biases = [], []
    for (w0, w1, wr, b) in params:
        fin, fout = w0.shape

        def pad(w):
            return jnp.zeros((f_pad, f_pad), jnp.float32).at[:fin, :fout].set(w)

        wcat = jnp.concatenate([pad(w0), pad(w1), pad(wr)], axis=1)   # [F, 3F]
        wcats.append(wcat.astype(dtype))
        biases.append(jnp.zeros((1, f_pad), jnp.float32).at[:, :fout].set(b))
    return jnp.stack(wcats, axis=0), jnp.stack(biases, axis=0)        # [L,F,3F], [L,1,F]


def splinenet_forward(params, x, edge_index, edge_attr, batch, num_graphs):
    # TODO(synk): the reference's `if len(SVDOrNot) == 2` branch (torch.svd of x
    # + np.save to disk, driven by an undefined global) is a logging side effect
    # with file I/O; not implemented.
    # TODO(synk): the reference calls the last SplineConv without edge_attr
    # (which torch_geometric would reject); we reuse the same edge_attr here.
    n, fin = x.shape
    num_layers = len(params)
    num_classes = params[-1][0].shape[1]
    F = F_PAD

    a = build_dense_graph(edge_index, edge_attr, n)                   # [2, N, N] bf16
    wcat_all, bias_all = pack_params(params)                          # [L,F,3F], [L,1,F]
    x_pad = jnp.zeros((n, F), jnp.float32).at[:, :fin].set(x).astype(jnp.bfloat16)
    pmean, selt = build_pool_mats(batch.astype(jnp.int32), num_graphs, n)

    kernel = functools.partial(
        _splinenet_kernel, num_layers=num_layers, feat_pad=F,
        num_classes=num_classes, num_graphs=num_graphs)

    # Advisory cost estimate (runtime scales as N^2 via the aggregation dots).
    flops = int(num_layers * (2 * n * F * 3 * F + 2 * 2 * n * n * F)
                + 2 * pmean.shape[0] * n * F)
    transcendentals = int((num_layers - 1) * n * F + num_graphs * 2 * num_classes)
    out_bytes = num_graphs * 2 * num_classes * 4
    bytes_accessed = int(_nbytes(a) + _nbytes(x_pad) + _nbytes(wcat_all)
                         + _nbytes(bias_all) + _nbytes(pmean) + _nbytes(selt)
                         + out_bytes)
    cost = pl.CostEstimate(flops=flops, transcendentals=transcendentals,
                           bytes_accessed=bytes_accessed)

    # Explicit VMEM budget: auto-pipelined small operands are double-buffered
    # (x2); the adjacency is single-buffered (scratch); + generous headroom.
    vmem_limit = int(min(
        64 * 1024 * 1024,
        2 * (_nbytes(x_pad) + _nbytes(wcat_all) + _nbytes(bias_all)
             + _nbytes(pmean) + _nbytes(selt))
        + _nbytes(a) + (8 << 20)))

    return pl.pallas_call(
        kernel,
        grid=(1,),
        in_specs=[_full_spec(x_pad.shape),
                  pl.BlockSpec(memory_space=pl.ANY),     # adjacency: manual DMA
                  _full_spec(wcat_all.shape),
                  _full_spec(bias_all.shape),
                  _full_spec(pmean.shape),
                  _full_spec(selt.shape)],
        out_specs=_full_spec((num_graphs, 2 * num_classes)),
        out_shape=jax.ShapeDtypeStruct((num_graphs, 2 * num_classes), jnp.float32),
        scratch_shapes=[pltpu.VMEM(a.shape, jnp.bfloat16)],
        compiler_params=pltpu.CompilerParams(
            dimension_semantics=("arbitrary",),
            vmem_limit_bytes=vmem_limit),
        cost_estimate=cost,
    )(x_pad, a, wcat_all, bias_all, pmean, selt)


# ---------------------------------------------------------------------------
# Main
# ---------------------------------------------------------------------------
if __name__ == "__main__":
    key = jax.random.PRNGKey(0)

    num_features = 4
    width = [32, 16]
    num_classes = 3
    num_nodes = 16          # two graphs of 8 nodes each
    num_graphs = 2
    edges_per_graph = 20

    kx, ke1, ke2, ke3, ke4, ka, kp = jax.random.split(key, 7)

    x = jax.random.normal(kx, (num_nodes, num_features), jnp.float32)

    src0 = jax.random.randint(ke1, (edges_per_graph,), 0, 8)
    dst0 = jax.random.randint(ke2, (edges_per_graph,), 0, 8)
    src1 = jax.random.randint(ke3, (edges_per_graph,), 8, 16)
    dst1 = jax.random.randint(ke4, (edges_per_graph,), 8, 16)
    edge_index = jnp.stack([jnp.concatenate([src0, src1]),
                            jnp.concatenate([dst0, dst1])]).astype(jnp.int32)   # [2, E]
    edge_attr = jax.random.uniform(ka, (2 * edges_per_graph, 1), jnp.float32)   # [E, 1]

    batch = jnp.array([0] * 8 + [1] * 8, dtype=jnp.int32)

    params = init_splinenet_params(kp, num_features, width, num_classes)

    out = splinenet_forward(params, x, edge_index, edge_attr, batch, num_graphs)
    out = jax.block_until_ready(out)

    assert out.shape == (num_graphs, 2 * num_classes), out.shape
    assert bool(jnp.all(jnp.isfinite(out)))
    # rows of log_softmax should (exp-)sum to ~1
    assert bool(jnp.allclose(jnp.sum(jnp.exp(out), axis=1), 1.0, atol=1e-5))

    print("KERNEL_OK")
</pallas_src>

<mosaic_0001>
module attributes {stable_mosaic.version = 11 : i64} {
  func.func @_splinenet_kernel(%arg0: i32, %arg1: memref<16x128xbf16, #tpu.memory_space<vmem>>, %arg2: memref<2x16x16xbf16, #tpu.memory_space<any>>, %arg3: memref<3x128x384xbf16, #tpu.memory_space<vmem>>, %arg4: memref<3x1x128xf32, #tpu.memory_space<vmem>>, %arg5: memref<8x16xf32, #tpu.memory_space<vmem>>, %arg6: memref<16x8xf32, #tpu.memory_space<vmem>>, %arg7: memref<2x6xf32, #tpu.memory_space<vmem>>, %arg8: memref<2x16x16xbf16, #tpu.memory_space<vmem>>) attributes {dimension_semantics = [#tpu.dimension_semantics<arbitrary>], iteration_bounds = array<i64: 1>, scalar_prefetch = 0 : i64, scratch_operands = 1 : i64, tpu.core_type = #tpu.core_type<tc>, window_params = [{pipeline_mode = #tpu.pipeline_mode<synchronous>, transform_indices = @transform_0, window_bounds = array<i64: 16, 128>}, {}, {pipeline_mode = #tpu.pipeline_mode<synchronous>, transform_indices = @transform_2, window_bounds = array<i64: 3, 128, 384>}, {pipeline_mode = #tpu.pipeline_mode<synchronous>, transform_indices = @transform_3, window_bounds = array<i64: 3, 1, 128>}, {pipeline_mode = #tpu.pipeline_mode<synchronous>, transform_indices = @transform_4, window_bounds = array<i64: 8, 16>}, {pipeline_mode = #tpu.pipeline_mode<synchronous>, transform_indices = @transform_5, window_bounds = array<i64: 16, 8>}, {pipeline_mode = #tpu.pipeline_mode<synchronous>, transform_indices = @transform_6, window_bounds = array<i64: 2, 6>}]} {
    "tpu.region"() ({
      %103 = tpu.sem_alloc : memref<!tpu.dma_semaphore, #tpu.memory_space<semaphore_mem>>
      tpu.enqueue_dma source(%arg2 : memref<2x16x16xbf16, #tpu.memory_space<any>>) target(%arg8 : memref<2x16x16xbf16, #tpu.memory_space<vmem>>) target_semaphore(%103 : memref<!tpu.dma_semaphore, #tpu.memory_space<semaphore_mem>>)
      tpu.wait_dma2 semaphore(%103 : memref<!tpu.dma_semaphore, #tpu.memory_space<semaphore_mem>>) src(%arg2 : memref<2x16x16xbf16, #tpu.memory_space<any>>) dst(%arg8 : memref<2x16x16xbf16, #tpu.memory_space<vmem>>)
      tpu.yield
    }) : () -> ()
    %c0 = arith.constant 0 : index
    %c0_0 = arith.constant 0 : index
    %c0_1 = arith.constant 0 : index
    %0 = vector.load %arg8[%c0, %c0_0, %c0_1] : memref<2x16x16xbf16, #tpu.memory_space<vmem>>, vector<1x16x16xbf16>
    %1 = vector.shape_cast %0 : vector<1x16x16xbf16> to vector<16x16xbf16>
    %c1 = arith.constant 1 : index
    %c0_2 = arith.constant 0 : index
    %c0_3 = arith.constant 0 : index
    %2 = vector.load %arg8[%c1, %c0_2, %c0_3] : memref<2x16x16xbf16, #tpu.memory_space<vmem>>, vector<1x16x16xbf16>
    %3 = vector.shape_cast %2 : vector<1x16x16xbf16> to vector<16x16xbf16>
    %c0_4 = arith.constant 0 : index
    %c0_5 = arith.constant 0 : index
    %4 = vector.load %arg1[%c0_4, %c0_5] : memref<16x128xbf16, #tpu.memory_space<vmem>>, vector<16x128xbf16>
    %c0_6 = arith.constant 0 : index
    %c0_7 = arith.constant 0 : index
    %c0_8 = arith.constant 0 : index
    %5 = vector.load %arg3[%c0_6, %c0_7, %c0_8] : memref<3x128x384xbf16, #tpu.memory_space<vmem>>, vector<1x128x384xbf16>
    %6 = vector.shape_cast %5 : vector<1x128x384xbf16> to vector<128x384xbf16>
    %cst = arith.constant dense<0.000000e+00> : vector<16x384xf32>
    %7 = tpu.matmul %4, %6, %cst {dimension_numbers = #tpu.dot_dimension_numbers<[1], [0], [0], [1], [0, 0, 1, 1], [], []>} : vector<16x128xbf16>, vector<128x384xbf16>, vector<16x384xf32> -> vector<16x384xf32>
    %8 = vector.extract_strided_slice %7 {offsets = [0, 0], sizes = [16, 256], strides = [1, 1]} : vector<16x384xf32> to vector<16x256xf32>
    %9 = arith.truncf %8 : vector<16x256xf32> to vector<16x256xbf16>
    %10 = vector.extract_strided_slice %9 {offsets = [0, 0], sizes = [16, 128], strides = [1, 1]} : vector<16x256xbf16> to vector<16x128xbf16>
    %cst_9 = arith.constant dense<0.000000e+00> : vector<16x128xf32>
    %11 = tpu.matmul %1, %10, %cst_9 {dimension_numbers = #tpu.dot_dimension_numbers<[1], [0], [0], [1], [0, 0, 1, 1], [], []>} : vector<16x16xbf16>, vector<16x128xbf16>, vector<16x128xf32> -> vector<16x128xf32>
    %12 = vector.extract_strided_slice %9 {offsets = [0, 128], sizes = [16, 128], strides = [1, 1]} : vector<16x256xbf16> to vector<16x128xbf16>
    %cst_10 = arith.constant dense<0.000000e+00> : vector<16x128xf32>
    %13 = tpu.matmul %3, %12, %cst_10 {dimension_numbers = #tpu.dot_dimension_numbers<[1], [0], [0], [1], [0, 0, 1, 1], [], []>} : vector<16x16xbf16>, vector<16x128xbf16>, vector<16x128xf32> -> vector<16x128xf32>
    %14 = arith.addf %11, %13 : vector<16x128xf32>
    %15 = vector.extract_strided_slice %7 {offsets = [0, 256], sizes = [16, 128], strides = [1, 1]} : vector<16x384xf32> to vector<16x128xf32>
    %16 = arith.addf %14, %15 : vector<16x128xf32>
    %c0_11 = arith.constant 0 : index
    %c0_12 = arith.constant 0 : index
    %c0_13 = arith.constant 0 : index
    %17 = vector.load %arg4[%c0_11, %c0_12, %c0_13] : memref<3x1x128xf32, #tpu.memory_space<vmem>>, vector<1x1x128xf32>
    %18 = vector.shape_cast %17 : vector<1x1x128xf32> to vector<1x128xf32>
    %19 = vector.broadcast %18 : vector<1x128xf32> to vector<16x128xf32>
    %20 = arith.addf %16, %19 : vector<16x128xf32>
    %21 = arith.negf %20 : vector<16x128xf32>
    %22 = math.exp %21 : vector<16x128xf32>
    %cst_14 = arith.constant 1.000000e+00 : f32
    %23 = vector.broadcast %cst_14 : f32 to vector<16x128xf32>
    %24 = arith.addf %23, %22 : vector<16x128xf32>
    %25 = arith.divf %23, %24 : vector<16x128xf32>
    %26 = arith.mulf %20, %25 : vector<16x128xf32>
    %27 = arith.truncf %26 : vector<16x128xf32> to vector<16x128xbf16>
    %c1_15 = arith.constant 1 : index
    %c0_16 = arith.constant 0 : index
    %c0_17 = arith.constant 0 : index
    %28 = vector.load %arg3[%c1_15, %c0_16, %c0_17] : memref<3x128x384xbf16, #tpu.memory_space<vmem>>, vector<1x128x384xbf16>
    %29 = vector.shape_cast %28 : vector<1x128x384xbf16> to vector<128x384xbf16>
    %cst_18 = arith.constant dense<0.000000e+00> : vector<16x384xf32>
    %30 = tpu.matmul %27, %29, %cst_18 {dimension_numbers = #tpu.dot_dimension_numbers<[1], [0], [0], [1], [0, 0, 1, 1], [], []>} : vector<16x128xbf16>, vector<128x384xbf16>, vector<16x384xf32> -> vector<16x384xf32>
    %31 = vector.extract_strided_slice %30 {offsets = [0, 0], sizes = [16, 256], strides = [1, 1]} : vector<16x384xf32> to vector<16x256xf32>
    %32 = arith.truncf %31 : vector<16x256xf32> to vector<16x256xbf16>
    %33 = vector.extract_strided_slice %32 {offsets = [0, 0], sizes = [16, 128], strides = [1, 1]} : vector<16x256xbf16> to vector<16x128xbf16>
    %cst_19 = arith.constant dense<0.000000e+00> : vector<16x128xf32>
    %34 = tpu.matmul %1, %33, %cst_19 {dimension_numbers = #tpu.dot_dimension_numbers<[1], [0], [0], [1], [0, 0, 1, 1], [], []>} : vector<16x16xbf16>, vector<16x128xbf16>, vector<16x128xf32> -> vector<16x128xf32>
    %35 = vector.extract_strided_slice %32 {offsets = [0, 128], sizes = [16, 128], strides = [1, 1]} : vector<16x256xbf16> to vector<16x128xbf16>
    %cst_20 = arith.constant dense<0.000000e+00> : vector<16x128xf32>
    %36 = tpu.matmul %3, %35, %cst_20 {dimension_numbers = #tpu.dot_dimension_numbers<[1], [0], [0], [1], [0, 0, 1, 1], [], []>} : vector<16x16xbf16>, vector<16x128xbf16>, vector<16x128xf32> -> vector<16x128xf32>
    %37 = arith.addf %34, %36 : vector<16x128xf32>
    %38 = vector.extract_strided_slice %30 {offsets = [0, 256], sizes = [16, 128], strides = [1, 1]} : vector<16x384xf32> to vector<16x128xf32>
    %39 = arith.addf %37, %38 : vector<16x128xf32>
    %c1_21 = arith.constant 1 : index
    %c0_22 = arith.constant 0 : index
    %c0_23 = arith.constant 0 : index
    %40 = vector.load %arg4[%c1_21, %c0_22, %c0_23] : memref<3x1x128xf32, #tpu.memory_space<vmem>>, vector<1x1x128xf32>
    %41 = vector.shape_cast %40 : vector<1x1x128xf32> to vector<1x128xf32>
    %42 = vector.broadcast %41 : vector<1x128xf32> to vector<16x128xf32>
    %43 = arith.addf %39, %42 : vector<16x128xf32>
    %44 = arith.negf %43 : vector<16x128xf32>
    %45 = math.exp %44 : vector<16x128xf32>
    %cst_24 = arith.constant 1.000000e+00 : f32
    %46 = vector.broadcast %cst_24 : f32 to vector<16x128xf32>
    %47 = arith.addf %46, %45 : vector<16x128xf32>
    %48 = arith.divf %46, %47 : vector<16x128xf32>
    %49 = arith.mulf %43, %48 : vector<16x128xf32>
    %50 = arith.truncf %49 : vector<16x128xf32> to vector<16x128xbf16>
    %c2 = arith.constant 2 : index
    %c0_25 = arith.constant 0 : index
    %c0_26 = arith.constant 0 : index
    %51 = vector.load %arg3[%c2, %c0_25, %c0_26] : memref<3x128x384xbf16, #tpu.memory_space<vmem>>, vector<1x128x384xbf16>
    %52 = vector.shape_cast %51 : vector<1x128x384xbf16> to vector<128x384xbf16>
    %cst_27 = arith.constant dense<0.000000e+00> : vector<16x384xf32>
    %53 = tpu.matmul %50, %52, %cst_27 {dimension_numbers = #tpu.dot_dimension_numbers<[1], [0], [0], [1], [0, 0, 1, 1], [], []>} : vector<16x128xbf16>, vector<128x384xbf16>, vector<16x384xf32> -> vector<16x384xf32>
    %54 = vector.extract_strided_slice %53 {offsets = [0, 0], sizes = [16, 256], strides = [1, 1]} : vector<16x384xf32> to vector<16x256xf32>
    %55 = arith.truncf %54 : vector<16x256xf32> to vector<16x256xbf16>
    %56 = vector.extract_strided_slice %55 {offsets = [0, 0], sizes = [16, 128], strides = [1, 1]} : vector<16x256xbf16> to vector<16x128xbf16>
    %cst_28 = arith.constant dense<0.000000e+00> : vector<16x128xf32>
    %57 = tpu.matmul %1, %56, %cst_28 {dimension_numbers = #tpu.dot_dimension_numbers<[1], [0], [0], [1], [0, 0, 1, 1], [], []>} : vector<16x16xbf16>, vector<16x128xbf16>, vector<16x128xf32> -> vector<16x128xf32>
    %58 = vector.extract_strided_slice %55 {offsets = [0, 128], sizes = [16, 128], strides = [1, 1]} : vector<16x256xbf16> to vector<16x128xbf16>
    %cst_29 = arith.constant dense<0.000000e+00> : vector<16x128xf32>
    %59 = tpu.matmul %3, %58, %cst_29 {dimension_numbers = #tpu.dot_dimension_numbers<[1], [0], [0], [1], [0, 0, 1, 1], [], []>} : vector<16x16xbf16>, vector<16x128xbf16>, vector<16x128xf32> -> vector<16x128xf32>
    %60 = arith.addf %57, %59 : vector<16x128xf32>
    %61 = vector.extract_strided_slice %53 {offsets = [0, 256], sizes = [16, 128], strides = [1, 1]} : vector<16x384xf32> to vector<16x128xf32>
    %62 = arith.addf %60, %61 : vector<16x128xf32>
    %c2_30 = arith.constant 2 : index
    %c0_31 = arith.constant 0 : index
    %c0_32 = arith.constant 0 : index
    %63 = vector.load %arg4[%c2_30, %c0_31, %c0_32] : memref<3x1x128xf32, #tpu.memory_space<vmem>>, vector<1x1x128xf32>
    %64 = vector.shape_cast %63 : vector<1x1x128xf32> to vector<1x128xf32>
    %65 = vector.broadcast %64 : vector<1x128xf32> to vector<16x128xf32>
    %66 = arith.addf %62, %65 : vector<16x128xf32>
    %c0_33 = arith.constant 0 : index
    %c0_34 = arith.constant 0 : index
    %67 = vector.load %arg5[%c0_33, %c0_34] : memref<8x16xf32, #tpu.memory_space<vmem>>, vector<8x16xf32>
    %cst_35 = arith.constant dense<0.000000e+00> : vector<8x128xf32>
    %68 = tpu.matmul %67, %66, %cst_35 {dimension_numbers = #tpu.dot_dimension_numbers<[1], [0], [0], [1], [0, 0, 1, 1], [], []>} : vector<8x16xf32>, vector<16x128xf32>, vector<8x128xf32> -> vector<8x128xf32>
    %c0_36 = arith.constant 0 : index
    %c0_37 = arith.constant 0 : index
    %69 = vector.load %arg6[%c0_36, %c0_37] : memref<16x8xf32, #tpu.memory_space<vmem>>, vector<16x8xf32>
    %70 = vector.extract_strided_slice %69 {offsets = [0, 0], sizes = [16, 1], strides = [1, 1]} : vector<16x8xf32> to vector<16x1xf32>
    %cst_38 = arith.constant 1.000000e+00 : f32
    %71 = vector.broadcast %cst_38 : f32 to vector<16x1xf32>
    %72 = arith.subf %70, %71 : vector<16x1xf32>
    %cst_39 = arith.constant 1.000000e+30 : f32
    %73 = vector.broadcast %cst_39 : f32 to vector<16x1xf32>
    %74 = arith.mulf %72, %73 : vector<16x1xf32>
    %75 = vector.broadcast %74 : vector<16x1xf32> to vector<16x128xf32>
    %76 = arith.addf %66, %75 : vector<16x128xf32>
    %cst_40 = arith.constant dense<0xFF800000> : vector<128xf32>
    %77 = vector.multi_reduction <maximumf>, %76, %cst_40 [0] : vector<16x128xf32> to vector<128xf32>
    %78 = vector.shape_cast %77 : vector<128xf32> to vector<1x128xf32>
    %79 = vector.extract_strided_slice %69 {offsets = [0, 1], sizes = [16, 1], strides = [1, 1]} : vector<16x8xf32> to vector<16x1xf32>
    %cst_41 = arith.constant 1.000000e+00 : f32
    %80 = vector.broadcast %cst_41 : f32 to vector<16x1xf32>
    %81 = arith.subf %79, %80 : vector<16x1xf32>
    %cst_42 = arith.constant 1.000000e+30 : f32
    %82 = vector.broadcast %cst_42 : f32 to vector<16x1xf32>
    %83 = arith.mulf %81, %82 : vector<16x1xf32>
    %84 = vector.broadcast %83 : vector<16x1xf32> to vector<16x128xf32>
    %85 = arith.addf %66, %84 : vector<16x128xf32>
    %cst_43 = arith.constant dense<0xFF800000> : vector<128xf32>
    %86 = vector.multi_reduction <maximumf>, %85, %cst_43 [0] : vector<16x128xf32> to vector<128xf32>
    %87 = vector.shape_cast %86 : vector<128xf32> to vector<1x128xf32>
    %88 = tpu.concatenate %78, %87 in 0 : vector<1x128xf32>, vector<1x128xf32> -> vector<2x128xf32>
    %89 = vector.extract_strided_slice %88 {offsets = [0, 0], sizes = [2, 3], strides = [1, 1]} : vector<2x128xf32> to vector<2x3xf32>
    %90 = vector.extract_strided_slice %68 {offsets = [0, 0], sizes = [2, 3], strides = [1, 1]} : vector<8x128xf32> to vector<2x3xf32>
    %91 = tpu.concatenate %89, %90 in 1 : vector<2x3xf32>, vector<2x3xf32> -> vector<2x6xf32>
    %cst_44 = arith.constant dense<0xFF800000> : vector<2xf32>
    %92 = vector.multi_reduction <maximumf>, %91, %cst_44 [1] : vector<2x6xf32> to vector<2xf32>
    %93 = vector.shape_cast %92 : vector<2xf32> to vector<2x1xf32>
    %94 = vector.broadcast %93 : vector<2x1xf32> to vector<2x6xf32>
    %95 = arith.subf %91, %94 : vector<2x6xf32>
    %96 = math.exp %95 : vector<2x6xf32>
    %cst_45 = arith.constant dense<0.000000e+00> : vector<2xf32>
    %97 = vector.multi_reduction <add>, %96, %cst_45 [1] : vector<2x6xf32> to vector<2xf32>
    %98 = vector.shape_cast %97 : vector<2xf32> to vector<2x1xf32>
    %99 = math.log %98 : vector<2x1xf32>
    %100 = vector.broadcast %99 : vector<2x1xf32> to vector<2x6xf32>
    %101 = arith.subf %95, %100 : vector<2x6xf32>
    %c0_46 = arith.constant 0 : index
    %c0_47 = arith.constant 0 : index
    %102 = vector.load %arg7[%c0_46, %c0_47] : memref<2x6xf32, #tpu.memory_space<vmem>>, vector<2x6xf32>
    tpu.vector_store %arg7[%c0_46, %c0_47], %101 {strides = array<i32>} : memref<2x6xf32, #tpu.memory_space<vmem>>, vector<2x6xf32>,
    return
  }
  func.func @transform_0(%arg0: i32) -> (i32, i32) {
    %c0_i32 = arith.constant 0 : i32
    %c0_i32_0 = arith.constant 0 : i32
    %c0_i32_1 = arith.constant 0 : i32
    return %c0_i32, %c0_i32_0 : i32, i32
  }
  func.func @transform_2(%arg0: i32) -> (i32, i32, i32) {
    %c0_i32 = arith.constant 0 : i32
    %c0_i32_0 = arith.constant 0 : i32
    %c0_i32_1 = arith.constant 0 : i32
    %c0_i32_2 = arith.constant 0 : i32
    return %c0_i32, %c0_i32_0, %c0_i32_1 : i32, i32, i32
  }
  func.func @transform_3(%arg0: i32) -> (i32, i32, i32) {
    %c0_i32 = arith.constant 0 : i32
    %c0_i32_0 = arith.constant 0 : i32
    %c0_i32_1 = arith.constant 0 : i32
    %c0_i32_2 = arith.constant 0 : i32
    return %c0_i32, %c0_i32_0, %c0_i32_1 : i32, i32, i32
  }
  func.func @transform_4(%arg0: i32) -> (i32, i32) {
    %c0_i32 = arith.constant 0 : i32
    %c0_i32_0 = arith.constant 0 : i32
    %c0_i32_1 = arith.constant 0 : i32
    return %c0_i32, %c0_i32_0 : i32, i32
  }
  func.func @transform_5(%arg0: i32) -> (i32, i32) {
    %c0_i32 = arith.constant 0 : i32
    %c0_i32_0 = arith.constant 0 : i32
    %c0_i32_1 = arith.constant 0 : i32
    return %c0_i32, %c0_i32_0 : i32, i32
  }
  func.func @transform_6(%arg0: i32) -> (i32, i32) {
    %c0_i32 = arith.constant 0 : i32
    %c0_i32_0 = arith.constant 0 : i32
    %c0_i32_1 = arith.constant 0 : i32
    return %c0_i32, %c0_i32_0 : i32, i32
  }
}

</mosaic_0001>

<bundles_post_ra>
// kernel: tpu_custom_call.1
= control target key start
LH: loop header
LB: loop body
LE: loop exit
PB: predicated region body
PF: predicated region fallthrough
CT: control target
= control target key end

     0   :  { %11 = vsyncpa [#allocation4], 0  ;;  %s1963_s0 = inlined_call_operand.vmem [shape: bf16[16,128], index: 0, kind: input, shape index: {}]   ;;  %s1964_s1 = inlined_call_operand.vmem [shape: bf16[2,16,16], index: 1, kind: input, shape index: {}]   ;;  %s1965_s2 = inlined_call_operand.hbm [shape: bf16[3,128,384], index: 2, kind: input, shape index: {}]   ;;  %s1966_s3 = inlined_call_operand.hbm [shape: f32[3,1,128], index: 3, kind: input, shape index: {}]   ;;  %s1967_s4 = inlined_call_operand.vmem [shape: f32[8,16], index: 4, kind: input, shape index: {}]   ;;  %s1968_s5 = inlined_call_operand.vmem [shape: f32[16,8], index: 5, kind: input, shape index: {}]   ;;  %s1969_s6 = inlined_call_operand.hbm [shape: f32[2,6], index: 6, kind: output, shape index: {}]  }
   0x1   :  { %12 = vsyncpa [#allocation7], 0 }
   0x2   :  { %13 = vsyncpa [#allocation5], 0  ;;  %s1775_s21 = smov [#allocation3]   ;;  %s1701_s25 = scalar_lea.hbm %s1965_s2, 9216 }
   0x3   :  { %s21_s22 = sshll.u32 %s1775_s21, 4  ;;  %p1702_p0 = scmp.ne.s32.totalorder %s1965_s2, %s1701_s25  ;;  %s22_s22 = int_to_ptr.vmem [resolvable:$true] %s21_s22 }
   0x4   :  { %p1705_p1 = scmp.lt.u32.totalorder %s1701_s25, %s1965_s2 }
   0x6   :  { %p1707_p2 = pnand %p1705_p1, %p1702_p0 }
   0x8   :  { %1710 = shalt.err (!%p1707_p2)
}
   0x9   :  { %s1711_s30 = scalar_lea.vmem %s22_s22, 9216  ;;  %p1716_p4 = scmp.lt.s32.totalorder %s22_s22, %s22_s22 }
   0xa   :  { %p1712_p3 = scmp.ne.s32.totalorder %s22_s22, %s1711_s30  ;;  %p1717_p5 = scmp.lt.s32.totalorder %s1711_s30, %s1711_s30 }
   0xc   :  { %p1718_p6 = por %p1717_p5, %p1716_p4 }
   0xe   :  { %p1719_p7 = pnand %p1718_p6, %p1712_p3 }
  0x10   :  { %1722 = shalt.err (!%p1719_p7)
}
  0x11   :  { %s1776_s7 = smov 192   ;;  %s1777_s8 = smov 12  }
  0x12   :  { %27 = dma.hbm_to_vmem [thread:$0]  %s1965_s2, 9216, %s22_s22, [#allocation4], %s1776_s7, %s1776_s7, %s1777_s8  }
  0x13   :  { %s1778_s11 = smov [#allocation6]   ;;  %s1723_s15 = scalar_lea.hbm %s1966_s3, 48 }
  0x14   :  { %s33_s12 = sshll.u32 %s1778_s11, 4  ;;  %p1724_p8 = scmp.ne.s32.totalorder %s1966_s3, %s1723_s15  ;;  %s34_s12 = int_to_ptr.vmem [resolvable:$true] %s33_s12 }
  0x15   :  { %p1727_p9 = scmp.lt.u32.totalorder %s1723_s15, %s1966_s3 }
  0x17   :  { %p1729_p10 = pnand %p1727_p9, %p1724_p8 }
  0x19   :  { %1732 = shalt.err (!%p1729_p10)
}
  0x1a   :  { %s1733_s20 = scalar_lea.vmem %s34_s12, 48  ;;  %s1737_s2 = scalar_lea.vmem %s34_s12, 64 }
  0x1b   :  { %p1734_p11 = scmp.ne.s32.totalorder %s34_s12, %s1733_s20  ;;  %p1738_p12 = scmp.lt.s32.totalorder %s34_s12, %s34_s12 }
  0x1c   :  { %p1739_p13 = scmp.lt.s32.totalorder %s1737_s2, %s1733_s20 }
  0x1e   :  { %p1740_p0 = por %p1739_p13, %p1738_p12 }
  0x20   :  { %p1741_p1 = pnand %p1740_p0, %p1734_p11 }
  0x22   :  { %1744 = shalt.err (!%p1741_p1)
}
  0x23   :  { %s1779_s21 = smov 16   ;;  %s1780_s22 = smov 1  }
  0x24   :  { %39 = dma.hbm_to_vmem [thread:$0]  %s1966_s3, 48, %s34_s12, [#allocation7], %s1779_s21, %s1779_s21, %s1780_s22  }
  0x25   :  { %1767 = dma.done.wait [#allocation4], 9216  }
  0x26   :  { %1768 = vsyncadd [#allocation4], 4294958080 }
  0x27   :  { %1769 = dma.done.wait [#allocation7], 48  }
  0x28   :  { %1770 = vsyncadd [#allocation7], 4294967248 }
  0x29   :  { %v1850_v0 = vld [vmem:[%s1964_s1] sm:$0xff]  ;;  %v1855_v1 = vld [vmem:[%s1964_s1 + $0x8] sm:$0xff] }
  0x2a   :  { %94 = vsyncadd [#allocation9], 256 }
  0x2b   :  { %1771 = dma.done.wait [#allocation9], 256 }
  0x2c   :  { %1772 = vsyncadd [#allocation9], 4294967040  ;;  %v1584_v2 = vld [vmem:[#allocation3 + $0x4] ss:$12 sps:$4 sm:$0xff]   ;;  %v1586_v3 = vld [vmem:[#allocation3] ss:$12 sps:$4 sm:$0xff]  }
  0x2d   :  { %v1781_v4 = vmov 0   ;;  %v1782_v5 = vmov 0.0   ;;  %271 = vmatprep.subr.bf16.mxu0 %v1584_v2  ;;  %v1587_v6 = vld [vmem:[#allocation3 + $0x1c] ss:$12 sps:$4 sm:$0xff]   ;;  %vm1783_vm0 = vmmov 0   ;;  %v1608_v25 = vld [vmem:[%s1963_s0] sm:$0xff]  }
  0x2e   :  { %303 = vmatprep.mubr.bf16.mxu0 %v1781_v4  ;;  %1462 = vmatprep.subr.bf16.mxu1 %v1782_v5  ;;  %v1589_v7 = vld [vmem:[#allocation3 + $0x18] ss:$12 sps:$4 sm:$0xff]   ;;  %v1590_v8 = vld [vmem:[#allocation3 + $0x34] ss:$12 sps:$4 sm:$0xff]   ;;  %v1592_v9 = vld [vmem:[#allocation3 + $0x30] ss:$12 sps:$4 sm:$0xff]  }
  0x2f   :  { %1478 = vmatprep.mubr.msk.bf16.mxu1 %vm1783_vm0, %v1782_v5  ;;  %272 = vmatpush1.bf16.msra.mxu0 %v1586_v3  ;;  %v1593_v10 = vld [vmem:[#allocation3 + $0x4c] ss:$12 sps:$4 sm:$0xff]   ;;  %v1595_v11 = vld [vmem:[#allocation3 + $0x48] ss:$12 sps:$4 sm:$0xff]   ;;  %v1596_v12 = vld [vmem:[#allocation3 + $0x64] ss:$12 sps:$4 sm:$0xff]  }
  0x30   :  { %1581 = vset.pattern.permute.xlu0 %v1781_v4  ;;  %273 = vmatprep.subr.bf16.mxu0 %v1587_v6  ;;  %v1609_v13 = vld [vmem:[#allocation3 + $0x8] ss:$12 sps:$4 sm:$0xff]   ;;  %v1610_v14 = vld [vmem:[#allocation3 + $0x20] ss:$12 sps:$4 sm:$0xff]   ;;  %v1601_v17 = vld [vmem:[#allocation3 + $0x78] ss:$12 sps:$4 sm:$0xff]  }
  0x31   :  { %1463 = vmatpush3.bf16.msra.mxu1 %v1609_v13  ;;  %v1598_v15 = vld [vmem:[#allocation3 + $0x60] ss:$12 sps:$4 sm:$0xff]   ;;  %v1599_v16 = vld [vmem:[#allocation3 + $0x7c] ss:$12 sps:$4 sm:$0xff]   ;;  %v1611_v18 = vld [vmem:[#allocation3 + $0x38] ss:$12 sps:$4 sm:$0xff]  }
  0x32   :  { %1464 = vmatprep.subr.bf16.mxu1 %v1782_v5  ;;  %v1602_v19 = vld [vmem:[#allocation3 + $0x94] ss:$12 sps:$4 sm:$0xff]   ;;  %v1612_v20 = vld [vmem:[#allocation3 + $0x50] ss:$12 sps:$4 sm:$0xff]   ;;  %v1605_v22 = vld [vmem:[#allocation3 + $0xac] ss:$12 sps:$4 sm:$0xff]  }
  0x33   :  { %274 = vmatpush1.bf16.msra.mxu0 %v1589_v7  ;;  %v1604_v21 = vld [vmem:[#allocation3 + $0x90] ss:$12 sps:$4 sm:$0xff]   ;;  %v1613_v23 = vld [vmem:[#allocation3 + $0x68] ss:$12 sps:$4 sm:$0xff]   ;;  %v1614_v26 = vld [vmem:[#allocation3 + $0x80] ss:$12 sps:$4 sm:$0xff]  }
  0x34   :  { %275 = vmatprep.subr.bf16.mxu0 %v1590_v8  ;;  %v1607_v24 = vld [vmem:[#allocation3 + $0xa8] ss:$12 sps:$4 sm:$0xff]   ;;  %v1615_v27 = vld [vmem:[#allocation3 + $0x98] ss:$12 sps:$4 sm:$0xff]   ;;  %v1616_v28 = vld [vmem:[#allocation3 + $0xb0] ss:$12 sps:$4 sm:$0xff]  }
  0x35   :  { %1465 = vmatpush3.bf16.msra.mxu1 %v1610_v14  ;;  %vm357_vm1 = vcmask 130048   ;;  %v1619_v39 = vld [vmem:[#allocation3 + $0xc4] ss:$12 sps:$4 sm:$0xff]   ;;  %v1617_v40 = vld [vmem:[#allocation3 + $0xc0] ss:$12 sps:$4 sm:$0xff]   ;;  %vm1285_vm2 = vcmask 1040384  }
  0x36   :  { %1466 = vmatprep.subr.bf16.mxu1 %v1782_v5  ;;  %v1620_v41 = vld [vmem:[#allocation3 + $0xc8] ss:$12 sps:$4 sm:$0xff]   ;;  %v1621_v43 = vld [vmem:[#allocation3 + $0xd8] ss:$12 sps:$4 sm:$0xff]   ;;  %v1624_v44 = vld [vmem:[#allocation3 + $0xe0] ss:$12 sps:$4 sm:$0xff]  }
  0x37   :  { %276 = vmatpush1.bf16.msra.mxu0 %v1592_v9  ;;  %v1623_v42 = vld [vmem:[#allocation3 + $0xdc] ss:$12 sps:$4 sm:$0xff]   ;;  %v1627_v45 = vld [vmem:[#allocation3 + $0xf4] ss:$12 sps:$4 sm:$0xff]   ;;  %v1628_v47 = vld [vmem:[#allocation3 + $0xf8] ss:$12 sps:$4 sm:$0xff]  }
  0x38   :  { %277 = vmatprep.subr.bf16.mxu0 %v1593_v10  ;;  %v1625_v46 = vld [vmem:[#allocation3 + $0xf0] ss:$12 sps:$4 sm:$0xff]   ;;  %v1631_v48 = vld [vmem:[#allocation3 + $0x10c] ss:$12 sps:$4 sm:$0xff]   ;;  %v1629_v49 = vld [vmem:[#allocation3 + $0x108] ss:$12 sps:$4 sm:$0xff]  }
  0x39   :  { %1467 = vmatpush3.bf16.msra.mxu1 %v1611_v18  ;;  %v1632_v50 = vld [vmem:[#allocation3 + $0x110] ss:$12 sps:$4 sm:$0xff]   ;;  %v1633_v52 = vld [vmem:[#allocation3 + $0x120] ss:$12 sps:$4 sm:$0xff]   ;;  %v1636_v53 = vld [vmem:[#allocation3 + $0x128] ss:$12 sps:$4 sm:$0xff]  }
  0x3a   :  { %1468 = vmatprep.subr.bf16.mxu1 %v1782_v5  ;;  %v1635_v51 = vld [vmem:[#allocation3 + $0x124] ss:$12 sps:$4 sm:$0xff]   ;;  %v1639_v54 = vld [vmem:[#allocation3 + $0x13c] ss:$12 sps:$4 sm:$0xff]   ;;  %v1640_v56 = vld [vmem:[#allocation3 + $0x140] ss:$12 sps:$4 sm:$0xff]  }
  0x3b   :  { %278 = vmatpush1.bf16.msra.mxu0 %v1595_v11  ;;  %v1637_v55 = vld [vmem:[#allocation3 + $0x138] ss:$12 sps:$4 sm:$0xff]   ;;  %v1643_v57 = vld [vmem:[#allocation3 + $0x154] ss:$12 sps:$4 sm:$0xff]   ;;  %v1641_v58 = vld [vmem:[#allocation3 + $0x150] ss:$12 sps:$4 sm:$0xff]  }
  0x3c   :  { %279 = vmatprep.subr.bf16.mxu0 %v1596_v12  ;;  %v1644_v59 = vld [vmem:[#allocation3 + $0x158] ss:$12 sps:$4 sm:$0xff]   ;;  %v1645_v61 = vld [vmem:[#allocation3 + $0x168] ss:$12 sps:$4 sm:$0xff]   ;;  %v1648_v62 = vld [vmem:[#allocation3 + $0x170] ss:$12 sps:$4 sm:$0xff]  }
  0x3d   :  { %1469 = vmatpush3.bf16.msra.mxu1 %v1612_v20  ;;  %v1647_v60 = vld [vmem:[#allocation3 + $0x16c] ss:$12 sps:$4 sm:$0xff]   ;;  %v1358_v9 = vld [vmem:[#allocation6] ss:$0 sm:$0xff]  ;;  %s1786_s9 = smov 3   ;;  %vm1291_vm3 = vcmask 23552  }
  0x3e   :  { %1470 = vmatprep.subr.bf16.mxu1 %v1782_v5  ;;  %vm1293_vm4 = vcmask 41984  }
  0x3f   :  { %280 = vmatpush1.bf16.msra.mxu0 %v1598_v15 }
  0x40   :  { %281 = vmatprep.subr.bf16.mxu0 %v1599_v16 }
  0x41   :  { %1471 = vmatpush3.bf16.msra.mxu1 %v1613_v23 }
  0x42   :  { %1472 = vmatprep.subr.bf16.mxu1 %v1782_v5 }
  0x43   :  { %282 = vmatpush1.bf16.msra.mxu0 %v1601_v17 }
  0x44   :  { %283 = vmatprep.subr.bf16.mxu0 %v1602_v19 }
  0x45   :  { %1473 = vmatpush3.bf16.msra.mxu1 %v1614_v26 }
  0x46   :  { %1474 = vmatprep.subr.bf16.mxu1 %v1782_v5 }
  0x47   :  { %284 = vmatpush1.bf16.msra.mxu0 %v1604_v21 }
  0x48   :  { %285 = vmatprep.subr.bf16.mxu0 %v1605_v22 }
  0x49   :  { %1475 = vmatpush3.bf16.msra.mxu1 %v1615_v27 }
  0x4a   :  { %1476 = vmatprep.subr.bf16.mxu1 %v1782_v5 }
  0x4b   :  { %286 = vmatpush1.bf16.msra.mxu0 %v1607_v24 }
  0x4c   :  { %1482 = vmatprep.subr.bf16.mxu0 %v1782_v5 }
  0x4d   :  { %1477 = vmatpush3.bf16.msra.mxu1 %v1616_v28 }
  0x4e   :  { %304 = vmatmul.mubr.bf16.vlgmr.msra.gmra.mrb[0].mxu0 %v1608_v25  ;;  %1488 = vmatprep.subr.bf16.mxu1 %v1782_v5 }
  0x4f   :  { %1484 = vmatprep.mubr.msk.bf16.mxu0 %vm1783_vm0, %v1782_v5 }
  0x50   :  { %1479 = vmatmul.mubr.bf16.vlgmr.msra.gmra.mrb[0].mxu1 %v1608_v25 }
  0x51   :  { %1490 = vmatprep.mubr.msk.bf16.mxu1 %vm1783_vm0, %v1782_v5 }
 0x121   :  { %v305_v29 = vpop.f32.mrb[0].mxu0 }
 0x122   :  { %v307_v30 = vpop.f32.mrb[1].mxu0 }
 0x123   :  { %v309_v31 = vpop.f32.mrb[2].mxu0  ;;  %v1886_v35 = vpop.f32.mrb[0].mxu1 }
 0x124   :  { %v355_v32 = vpack.c.bf16 %v309_v31, %v305_v29  ;;  %v311_v33 = vpop.f32.mrb[3].mxu0  ;;  %v1480_v36 = vpop.f32.mrb[1].mxu1 }
 0x125   :  { %v356_v34 = vpack.c.bf16 %v311_v33, %v307_v30  ;;  %v1888_v37 = vpop.f32.mrb[2].mxu1 }
 0x126   :  { %1489 = vmatpush3.bf16.msra.mxu1 %v355_v32  ;;  %v1481_v38 = vpop.f32.mrb[3].mxu1 }
 0x127   :  { %1483 = vmatpush3.bf16.msra.mxu0 %v356_v34  ;;  %1494 = vmatprep.subr.bf16.mxu1 %v1782_v5 }
 0x128   :  { %633 = vmatprep.subr.bf16.mxu0 %v1619_v39  ;;  %v1651_v39 = vld [vmem:[#allocation3 + $0x184] ss:$12 sps:$4 sm:$0xff]  }
 0x129   :  { %1491 = vmatmul.mubr.msk.bf16.vlgmr.msra.gmra.mrb[4].mxu1 %vm357_vm1, %v1850_v0 }
 0x12a   :  { %1485 = vmatmul.mubr.msk.bf16.vlgmr.msra.gmra.mrb[4].mxu0 %vm357_vm1, %v1855_v1  ;;  %1510 = vmatprep.mubr.msk.bf16.mxu1 %vm1783_vm0, %v1782_v5 }
 0x12b   :  { %665 = vmatprep.mubr.bf16.mxu0 %v1781_v4  ;;  %634 = vmatpush1.bf16.msra.mxu0 %v1617_v40  ;;  %v1649_v40 = vld [vmem:[#allocation3 + $0x180] ss:$12 sps:$4 sm:$0xff]  }
 0x12c   :  { %1495 = vmatpush3.bf16.msra.mxu1 %v1620_v41  ;;  %635 = vmatprep.subr.bf16.mxu0 %v1623_v42  ;;  %v1652_v41 = vld [vmem:[#allocation3 + $0x188] ss:$12 sps:$4 sm:$0xff]  }
 0x12d   :  { %1496 = vmatprep.subr.bf16.mxu1 %v1782_v5  ;;  %v1655_v42 = vld [vmem:[#allocation3 + $0x19c] ss:$12 sps:$4 sm:$0xff]  }
 0x12f   :  { %636 = vmatpush1.bf16.msra.mxu0 %v1621_v43  ;;  %v1653_v43 = vld [vmem:[#allocation3 + $0x198] ss:$12 sps:$4 sm:$0xff]  }
 0x130   :  { %1497 = vmatpush3.bf16.msra.mxu1 %v1624_v44  ;;  %637 = vmatprep.subr.bf16.mxu0 %v1627_v45  ;;  %v1656_v44 = vld [vmem:[#allocation3 + $0x1a0] ss:$12 sps:$4 sm:$0xff]  }
 0x131   :  { %1498 = vmatprep.subr.bf16.mxu1 %v1782_v5  ;;  %v1659_v45 = vld [vmem:[#allocation3 + $0x1b4] ss:$12 sps:$4 sm:$0xff]  }
 0x133   :  { %638 = vmatpush1.bf16.msra.mxu0 %v1625_v46  ;;  %v1657_v46 = vld [vmem:[#allocation3 + $0x1b0] ss:$12 sps:$4 sm:$0xff]  }
 0x134   :  { %1499 = vmatpush3.bf16.msra.mxu1 %v1628_v47  ;;  %639 = vmatprep.subr.bf16.mxu0 %v1631_v48  ;;  %v1660_v47 = vld [vmem:[#allocation3 + $0x1b8] ss:$12 sps:$4 sm:$0xff]   ;;  %v1661_v48 = vld [vmem:[#allocation3 + $0x1c8] ss:$12 sps:$4 sm:$0xff]  }
 0x135   :  { %1500 = vmatprep.subr.bf16.mxu1 %v1782_v5 }
 0x137   :  { %640 = vmatpush1.bf16.msra.mxu0 %v1629_v49  ;;  %v1664_v49 = vld [vmem:[#allocation3 + $0x1d0] ss:$12 sps:$4 sm:$0xff]  }
 0x138   :  { %1501 = vmatpush3.bf16.msra.mxu1 %v1632_v50  ;;  %641 = vmatprep.subr.bf16.mxu0 %v1635_v51  ;;  %v1667_v50 = vld [vmem:[#allocation3 + $0x1e4] ss:$12 sps:$4 sm:$0xff]   ;;  %v1665_v51 = vld [vmem:[#allocation3 + $0x1e0] ss:$12 sps:$4 sm:$0xff]  }
 0x139   :  { %1502 = vmatprep.subr.bf16.mxu1 %v1782_v5 }
 0x13b   :  { %642 = vmatpush1.bf16.msra.mxu0 %v1633_v52  ;;  %v1668_v52 = vld [vmem:[#allocation3 + $0x1e8] ss:$12 sps:$4 sm:$0xff]  }
 0x13c   :  { %1503 = vmatpush3.bf16.msra.mxu1 %v1636_v53  ;;  %643 = vmatprep.subr.bf16.mxu0 %v1639_v54  ;;  %v1671_v53 = vld [vmem:[#allocation3 + $0x1fc] ss:$12 sps:$4 sm:$0xff]   ;;  %v1669_v54 = vld [vmem:[#allocation3 + $0x1f8] ss:$12 sps:$4 sm:$0xff]  }
 0x13d   :  { %1504 = vmatprep.subr.bf16.mxu1 %v1782_v5 }
 0x13f   :  { %644 = vmatpush1.bf16.msra.mxu0 %v1637_v55  ;;  %v1672_v55 = vld [vmem:[#allocation3 + $0x200] ss:$12 sps:$4 sm:$0xff]  }
 0x140   :  { %1505 = vmatpush3.bf16.msra.mxu1 %v1640_v56  ;;  %645 = vmatprep.subr.bf16.mxu0 %v1643_v57  ;;  %v1675_v56 = vld [vmem:[#allocation3 + $0x214] ss:$12 sps:$4 sm:$0xff]   ;;  %v1673_v57 = vld [vmem:[#allocation3 + $0x210] ss:$12 sps:$4 sm:$0xff]  }
 0x141   :  { %1506 = vmatprep.subr.bf16.mxu1 %v1782_v5 }
 0x143   :  { %646 = vmatpush1.bf16.msra.mxu0 %v1641_v58  ;;  %v1676_v58 = vld [vmem:[#allocation3 + $0x218] ss:$12 sps:$4 sm:$0xff]  }
 0x144   :  { %1507 = vmatpush3.bf16.msra.mxu1 %v1644_v59  ;;  %647 = vmatprep.subr.bf16.mxu0 %v1647_v60  ;;  %v1679_v59 = vld [vmem:[#allocation3 + $0x22c] ss:$12 sps:$4 sm:$0xff]   ;;  %v1677_v60 = vld [vmem:[#allocation3 + $0x228] ss:$12 sps:$4 sm:$0xff]  }
 0x145   :  { %1508 = vmatprep.subr.bf16.mxu1 %v1782_v5 }
 0x147   :  { %648 = vmatpush1.bf16.msra.mxu0 %v1645_v61  ;;  %v1680_v61 = vld [vmem:[#allocation3 + $0x230] ss:$12 sps:$4 sm:$0xff]  }
 0x148   :  { %1509 = vmatpush3.bf16.msra.mxu1 %v1648_v62  ;;  %1514 = vmatprep.subr.bf16.mxu0 %v1782_v5 }
 0x149   :  { %1520 = vmatprep.subr.bf16.mxu1 %v1782_v5 }
 0x1fc   :  { %v439_v63 = vpop.f32.mrb[4].mxu1 }
 0x1fd   :  { %v395_v2 = vpop.f32.mrb[4].mxu0  ;;  %v1492_v3 = vpop.f32.mrb[5].mxu1 }
 0x1fe   :  { %v440_v6 = vadd.f32 %v439_v63, %v395_v2  ;;  %v1486_v7 = vpop.f32.mrb[5].mxu0  ;;  %v442_v8 = vpop.f32.mrb[6].mxu1 }
 0x1ff   :  { %v398_v10 = vpop.f32.mrb[6].mxu0  ;;  %v1493_v11 = vpop.f32.mrb[7].mxu1 }
 0x200   :  { %v446_v12 = vadd.f32 %v440_v6, %v1886_v35  ;;  %v443_v13 = vadd.f32 %v442_v8, %v398_v10  ;;  %v1487_v14 = vpop.f32.mrb[7].mxu0  ;;  %v1387_v8 = vld [vmem:[#allocation6 + $0x1] ss:$0 sm:$0xff] }
 0x202   :  { %v455_v15 = vadd.f32 %v1358_v9, %v446_v12  ;;  %v447_v16 = vadd.f32 %v443_v13, %v1888_v37 }
 0x204   :  { %v1359_v17 = vmul.f32 -1.442695, %v455_v15  ;;  %v456_v18 = vadd.f32 %v1358_v9, %v447_v16 }
 0x206   :  { %1681 = vpow2.f32 %v1359_v17  ;;  %v1360_v19 = vmul.f32 -1.442695, %v456_v18 }
 0x208   :  { %1683 = vpow2.f32 %v1360_v19 }
 0x210   :  { %v1682_v20 = vpop.eup %1681 }
 0x211   :  { %v463_v21 = vadd.f32 1.0, %v1682_v20 }
 0x212   :  { %v1684_v22 = vpop.eup %1683 }
 0x213   :  { %1685 = vrcp.f32 %v463_v21  ;;  %v464_v23 = vadd.f32 1.0, %v1684_v22 }
 0x215   :  { %1687 = vrcp.f32 %v464_v23 }
 0x21d   :  { %v1686_v24 = vpop.eup %1685 }
 0x21e   :  { %v469_v26 = vmul.f32 %v1686_v24, %v455_v15 }
 0x21f   :  { %v1688_v25 = vpop.eup %1687 }
 0x220   :  { %v470_v27 = vmul.f32 %v1688_v25, %v456_v18 }
 0x222   :  { %v471_v28 = vpack.c.bf16 %v470_v27, %v469_v26 }
 0x224   :  { %666 = vmatmul.mubr.bf16.vlgmr.msra.gmra.mrb[8].mxu0 %v471_v28  ;;  %1511 = vmatmul.mubr.bf16.vlgmr.msra.gmra.mrb[8].mxu1 %v471_v28  ;;  %v1243_v28 = vld [vmem:[%s1968_s5] sm:$0xff] }
 0x225   :  { %1522 = vmatprep.mubr.msk.bf16.mxu1 %vm1783_vm0, %v1782_v5  ;;  %1516 = vmatprep.mubr.msk.bf16.mxu0 %vm1783_vm0, %v1782_v5 }
 0x2f7   :  { %v667_v29 = vpop.f32.mrb[8].mxu0  ;;  %v1905_v30 = vpop.f32.mrb[8].mxu1 }
 0x2f8   :  { %v669_v31 = vpop.f32.mrb[9].mxu0  ;;  %v1512_v32 = vpop.f32.mrb[9].mxu1 }
 0x2f9   :  { %v671_v33 = vpop.f32.mrb[10].mxu0  ;;  %v1907_v34 = vpop.f32.mrb[10].mxu1 }
 0x2fa   :  { %v717_v35 = vpack.c.bf16 %v671_v33, %v667_v29  ;;  %v673_v36 = vpop.f32.mrb[11].mxu0  ;;  %v1513_v37 = vpop.f32.mrb[11].mxu1  ;;  %v1244_v29 = vld [vmem:[%s1968_s5 + $0x8] sm:$0xff] }
 0x2fb   :  { %v718_v38 = vpack.c.bf16 %v673_v36, %v669_v31  ;;  %v1418_v31 = vadd.f32 -1.0, %v1243_v28  ;;  %v1419_v32 = vadd.f32 -1.0, %v1244_v29 }
 0x2fc   :  { %1521 = vmatpush3.bf16.msra.mxu1 %v717_v35 }
 0x2fd   :  { %1515 = vmatpush3.bf16.msra.mxu0 %v718_v38  ;;  %1526 = vmatprep.subr.bf16.mxu1 %v1782_v5  ;;  %v1247_v33 = vmul.f32 1e+30, %v1418_v31 }
 0x2fe   :  { %989 = vmatprep.subr.bf16.mxu0 %v1651_v39 }
 0x2ff   :  { %1523 = vmatmul.mubr.msk.bf16.vlgmr.msra.gmra.mrb[12].mxu1 %vm357_vm1, %v1850_v0  ;;  %1251 = vperm.xlu0 %1581, %v1247_v33  }
 0x300   :  { %1517 = vmatmul.mubr.msk.bf16.vlgmr.msra.gmra.mrb[12].mxu0 %vm357_vm1, %v1855_v1  ;;  %1542 = vmatprep.mubr.msk.bf16.mxu1 %vm1783_vm0, %v1782_v5 }
 0x301   :  { %1021 = vmatprep.mubr.bf16.mxu0 %v1781_v4  ;;  %990 = vmatpush1.bf16.msra.mxu0 %v1649_v40  ;;  %v1663_v4 = vld [vmem:[#allocation3 + $0x1cc] ss:$12 sps:$4 sm:$0xff]  }
 0x302   :  { %1527 = vmatpush3.bf16.msra.mxu1 %v1652_v41  ;;  %991 = vmatprep.subr.bf16.mxu0 %v1655_v42 }
 0x303   :  { %1528 = vmatprep.subr.bf16.mxu1 %v1782_v5 }
 0x305   :  { %992 = vmatpush1.bf16.msra.mxu0 %v1653_v43 }
 0x306   :  { %1529 = vmatpush3.bf16.msra.mxu1 %v1656_v44  ;;  %993 = vmatprep.subr.bf16.mxu0 %v1659_v45  ;;  %v1785_v45 = vmov 0.0|0.0  }
 0x307   :  { %1530 = vmatprep.subr.bf16.mxu1 %v1782_v5 }
 0x309   :  { %994 = vmatpush1.bf16.msra.mxu0 %v1657_v46 }
 0x30a   :  { %1531 = vmatpush3.bf16.msra.mxu1 %v1660_v47  ;;  %995 = vmatprep.subr.bf16.mxu0 %v1663_v4 }
 0x30b   :  { %1532 = vmatprep.subr.bf16.mxu1 %v1782_v5 }
 0x30d   :  { %996 = vmatpush1.bf16.msra.mxu0 %v1661_v48 }
 0x30e   :  { %1533 = vmatpush3.bf16.msra.mxu1 %v1664_v49  ;;  %997 = vmatprep.subr.bf16.mxu0 %v1667_v50 }
 0x30f   :  { %1534 = vmatprep.subr.bf16.mxu1 %v1782_v5 }
 0x311   :  { %998 = vmatpush1.bf16.msra.mxu0 %v1665_v51 }
 0x312   :  { %1535 = vmatpush3.bf16.msra.mxu1 %v1668_v52  ;;  %999 = vmatprep.subr.bf16.mxu0 %v1671_v53  ;;  %v1416_v53 = vld [vmem:[#allocation6 + $0x2] ss:$0 sm:$0xff] }
 0x313   :  { %1536 = vmatprep.subr.bf16.mxu1 %v1782_v5 }
 0x315   :  { %1000 = vmatpush1.bf16.msra.mxu0 %v1669_v54 }
 0x316   :  { %1537 = vmatpush3.bf16.msra.mxu1 %v1672_v55  ;;  %1001 = vmatprep.subr.bf16.mxu0 %v1675_v56 }
 0x317   :  { %1538 = vmatprep.subr.bf16.mxu1 %v1782_v5 }
 0x319   :  { %1002 = vmatpush1.bf16.msra.mxu0 %v1673_v57 }
 0x31a   :  { %1539 = vmatpush3.bf16.msra.mxu1 %v1676_v58  ;;  %1003 = vmatprep.subr.bf16.mxu0 %v1679_v59 }
 0x31b   :  { %1540 = vmatprep.subr.bf16.mxu1 %v1782_v5 }
 0x31d   :  { %1004 = vmatpush1.bf16.msra.mxu0 %v1677_v60 }
 0x31e   :  { %1541 = vmatpush3.bf16.msra.mxu1 %v1680_v61  ;;  %1546 = vmatprep.subr.bf16.mxu0 %v1782_v5 }
 0x31f   :  { %1552 = vmatprep.subr.bf16.mxu1 %v1782_v5 }
 0x37e   :  { %v1252_v4 = vpop.permute.xlu0 %1251 }
 0x3d2   :  { %v794_v62 = vpop.f32.mrb[12].mxu1 }
 0x3d3   :  { %v753_v63 = vpop.f32.mrb[12].mxu0  ;;  %v1524_v2 = vpop.f32.mrb[13].mxu1 }
 0x3d4   :  { %v795_v3 = vadd.f32 %v794_v62, %v753_v63  ;;  %v1518_v6 = vpop.f32.mrb[13].mxu0  ;;  %v797_v7 = vpop.f32.mrb[14].mxu1 }
 0x3d5   :  { %v756_v9 = vpop.f32.mrb[14].mxu0  ;;  %v1525_v10 = vpop.f32.mrb[15].mxu1 }
 0x3d6   :  { %v801_v11 = vadd.f32 %v795_v3, %v1905_v30  ;;  %v798_v12 = vadd.f32 %v797_v7, %v756_v9  ;;  %v1519_v13 = vpop.f32.mrb[15].mxu0  ;;  %v1784_v30 = vmov 1  }
 0x3d7   :  { %1582 = vset.pattern.permute.xlu1 %v1784_v30 }
 0x3d8   :  { %v811_v14 = vadd.f32 %v1387_v8, %v801_v11  ;;  %v802_v15 = vadd.f32 %v798_v12, %v1907_v34  ;;  %1269 = vperm.xlu1 %1582, %v1247_v33   ;;  %v1248_v34 = vmul.f32 1e+30, %v1419_v32 }
 0x3da   :  { %v1388_v16 = vmul.f32 -1.442695, %v811_v14  ;;  %v812_v17 = vadd.f32 %v1387_v8, %v802_v15  ;;  %1256 = vperm.xlu0 %1581, %v1248_v34   ;;  %v1169_v8 = vld [vmem:[%s1967_s4] sm:$0xff]  ;;  %s1787_s4 = smov [#allocation8]  }
 0x3db   :  { %s1313_s10 = sshll.u32 %s1787_s4, 4  ;;  %s1314_s10 = int_to_ptr.vmem [resolvable:$true] %s1313_s10 }
 0x3dc   :  { %1689 = vpow2.f32 %v1388_v16  ;;  %v1389_v18 = vmul.f32 -1.442695, %v812_v17  ;;  %1273 = vperm.xlu1 %1582, %v1248_v34   ;;  %s1745_s11 = scalar_lea.vmem %s1314_s10, 32  ;;  %p1750_p3 = scmp.lt.s32.totalorder %s1314_s10, %s1314_s10 }
 0x3dd   :  { %p1746_p2 = scmp.ne.s32.totalorder %s1314_s10, %s1745_s11  ;;  %p1751_p4 = scmp.lt.s32.totalorder %s1745_s11, %s1745_s11 }
 0x3de   :  { %1691 = vpow2.f32 %v1389_v18  ;;  %1583 = vset.pattern.permute.xlu0 %v1784_v30 }
 0x3df   :  { %p1752_p5 = por %p1751_p4, %p1750_p3 }
 0x3e1   :  { %p1753_p6 = pnand %p1752_p5, %p1746_p2 }
 0x3e6   :  { %v1690_v19 = vpop.eup %1689 }
 0x3e7   :  { %v819_v20 = vadd.f32 1.0, %v1690_v19 }
 0x3e8   :  { %v1692_v21 = vpop.eup %1691 }
 0x3e9   :  { %1693 = vrcp.f32 %v819_v20  ;;  %v820_v22 = vadd.f32 1.0, %v1692_v21 }
 0x3eb   :  { %1695 = vrcp.f32 %v820_v22 }
 0x3f3   :  { %v1694_v23 = vpop.eup %1693 }
 0x3f4   :  { %v825_v25 = vmul.f32 %v1694_v23, %v811_v14 }
 0x3f5   :  { %v1696_v24 = vpop.eup %1695 }
 0x3f6   :  { %v826_v26 = vmul.f32 %v1696_v24, %v812_v17 }
 0x3f8   :  { %v827_v27 = vpack.c.bf16 %v826_v26, %v825_v25 }
 0x3fa   :  { %1022 = vmatmul.mubr.bf16.vlgmr.msra.gmra.mrb[16].mxu0 %v827_v27  ;;  %1543 = vmatmul.mubr.bf16.vlgmr.msra.gmra.mrb[16].mxu1 %v827_v27 }
 0x3fb   :  { %1554 = vmatprep.mubr.msk.bf16.mxu1 %vm1783_vm0, %v1782_v5  ;;  %1548 = vmatprep.mubr.msk.bf16.mxu0 %vm1783_vm0, %v1782_v5 }
 0x457   :  { %v1270_v46 = vpop.permute.xlu1 %1269 }
 0x45b   :  { %v1274_v59 = vpop.permute.xlu1 %1273 }
 0x4cd   :  { %v1023_v35 = vpop.f32.mrb[16].mxu0  ;;  %v1066_v36 = vpop.f32.mrb[16].mxu1 }
 0x4ce   :  { %v1025_v37 = vpop.f32.mrb[17].mxu0  ;;  %v1544_v38 = vpop.f32.mrb[17].mxu1 }
 0x4cf   :  { %v1027_v39 = vpop.f32.mrb[18].mxu0  ;;  %v1069_v40 = vpop.f32.mrb[18].mxu1 }
 0x4d0   :  { %v1073_v41 = vpack.c.bf16 %v1027_v39, %v1023_v35  ;;  %v1029_v42 = vpop.f32.mrb[19].mxu0  ;;  %v1545_v43 = vpop.f32.mrb[19].mxu1 }
 0x4d1   :  { %v1074_v44 = vpack.c.bf16 %v1029_v42, %v1025_v37 }
 0x4d2   :  { %1553 = vmatpush3.bf16.msra.mxu1 %v1073_v41 }
 0x4d3   :  { %1547 = vmatpush3.bf16.msra.mxu0 %v1074_v44 }
 0x4d4   :  { %1565 = vmatprep.subr.bf16.mxu0 %v1785_v45 }
 0x4d5   :  { %1555 = vmatmul.mubr.msk.bf16.vlgmr.msra.gmra.mrb[20].mxu1 %vm357_vm1, %v1850_v0 }
 0x4d6   :  { %1549 = vmatmul.mubr.msk.bf16.vlgmr.msra.gmra.mrb[20].mxu0 %vm357_vm1, %v1855_v1 }
 0x4d7   :  { %1562 = vmatprep.mubr.msk.f32.mxu0 %vm1783_vm0, %v1782_v5  ;;  %v1257_v5 = vpop.permute.xlu0 %1256 }
 0x5a8   :  { %v1150_v47 = vpop.f32.mrb[20].mxu1 }
 0x5a9   :  { %v1109_v48 = vpop.f32.mrb[20].mxu0  ;;  %v1556_v49 = vpop.f32.mrb[21].mxu1 }
 0x5aa   :  { %v1151_v50 = vadd.f32 %v1150_v47, %v1109_v48  ;;  %v1550_v51 = vpop.f32.mrb[21].mxu0  ;;  %v1153_v52 = vpop.f32.mrb[22].mxu1 }
 0x5ab   :  { %v1112_v54 = vpop.f32.mrb[22].mxu0  ;;  %v1557_v55 = vpop.f32.mrb[23].mxu1 }
 0x5ac   :  { %v1157_v0 = vadd.f32 %v1151_v50, %v1066_v36  ;;  %v1154_v56 = vadd.f32 %v1153_v52, %v1112_v54  ;;  %v1551_v57 = vpop.f32.mrb[23].mxu0 }
 0x5ae   :  { %v1167_v1 = vadd.f32 %v1416_v53, %v1157_v0  ;;  %v1158_v58 = vadd.f32 %v1154_v56, %v1069_v40 }
 0x5b0   :  { %v1168_v60 = vadd.f32 %v1416_v53, %v1158_v58  ;;  %v1276_v61 = vadd.f32 %v1270_v46, %v1167_v1  ;;  %v1259_v62 = vadd.f32 %v1252_v4, %v1167_v1 }
 0x5b2   :  { %v1277_v63 = vadd.f32 %v1274_v59, %v1168_v60  ;;  %v1260_v2 = vadd.f32 %v1257_v5, %v1168_v60  ;;  %v1566_v3 = vpack.c.bf16 %v1168_v60, %v1167_v1 }
 0x5b4   :  { %v1278_v6 = vmax.f32 %v1276_v61, %v1277_v63  ;;  %v1261_v7 = vmax.f32 %v1259_v62, %v1260_v2  ;;  %1567 = vmatpush3.bf16.msra.mxu0 %v1566_v3 }
 0x5b6   :  { %v1279_v9 = vrot.slane %v1278_v6, 4  ;;  %v1262_v10 = vrot.slane %v1261_v7, 4 }
 0x5b7   :  { %1563 = vmatmul.mubr.msk.f32.vlgmr.msra.gmra.mrb[24].mxu0 %vm357_vm1, %v1169_v8 }
 0x5b8   :  { %v1280_v11 = vmax.f32 %v1278_v6, %v1279_v9  ;;  %v1263_v12 = vmax.f32 %v1261_v7, %v1262_v10 }
 0x5ba   :  { %v1281_v13 = vrot.slane %v1280_v11, 2  ;;  %v1264_v14 = vrot.slane %v1263_v12, 2 }
 0x5bc   :  { %v1282_v15 = vmax.f32 %v1280_v11, %v1281_v13  ;;  %v1265_v16 = vmax.f32 %v1263_v12, %v1264_v14 }
 0x5be   :  { %v1283_v17 = vrot.slane %v1282_v15, 1  ;;  %v1266_v18 = vrot.slane %v1265_v16, 1 }
 0x5c0   :  { %v1267_v19 = vmax.f32 %v1265_v16, %v1266_v18  ;;  %v1284_v20 = vmax.f32 %v1282_v15, %v1283_v17 }
 0x5c2   :  { %v1286_v21 = vsel %vm1285_vm2, %v1267_v19, %v1284_v20 }
 0x68a   :  { %v1239_v22 = vpop.f32.mrb[24].mxu0 }
 0x68b   :  { %1288 = vrot.lane.b32.xlu0 %v1239_v22, %s1786_s9  ;;  %v1564_v23 = vpop.f32.mrb[25].mxu0 }
 0x6fd   :  { %v1289_v24 = vpop.permute.xlu0 %1288 }
 0x6fe   :  { %v1292_v25 = vsel %vm1291_vm3, %v1286_v21, %v1289_v24 }
 0x6ff   :  { %v1294_v26 = vsel %vm1293_vm4, %v1292_v25, -inf }
 0x700   :  { %1295 = vmax.xlane.f32.xlu1 %v1294_v26 }
 0x78d   :  { %v1296_v27 = vpop.xlane.xlu1 %1295 }
 0x78e   :  { %v1297_v28 = vsub.f32 %v1292_v25, %v1296_v27 }
 0x790   :  { %v1298_v29 = vmul.f32 1.442695, %v1297_v28 }
 0x792   :  { %1697 = vpow2.f32 %v1298_v29 }
 0x79c   :  { %v1698_v30 = vpop.eup %1697 }
 0x79d   :  { %v1300_v31 = vsel %vm1293_vm4, %v1698_v30, 0.0 }
 0x79e   :  { %1301 = vadd.xlane.f32.xlu0 %v1300_v31 }
 0x82b   :  { %v1302_v32 = vpop.xlane.xlu0 %1301 }
 0x82c   :  { %1699 = vlog2.f32 %v1302_v32 }
 0x836   :  { %v1700_v33 = vpop.eup %1699 }
 0x837   :  { %v1304_v34 = vmul.f32 0.6931472, %v1700_v33 }
 0x839   :  { %v1305_v35 = vsub.f32 %v1297_v28, %v1304_v34 }
 0x83b   :  { %1306 = vst.msk [vmem:[#allocation8] sm:$0x3] %vm1293_vm4, %v1305_v35 }
 0x83c   :  { %1756 = shalt.err (!%p1753_p6)
}
 0x83d   :  { %s1757_s14 = scalar_lea.hbm %s1969_s6, 32 }
 0x83e   :  { %p1758_p7 = scmp.ne.s32.totalorder %s1969_s6, %s1757_s14  ;;  %p1761_p8 = scmp.lt.u32.totalorder %s1757_s14, %s1969_s6 }
 0x840   :  { %p1763_p9 = pnand %p1761_p8, %p1758_p7 }
 0x842   :  { %1766 = shalt.err (!%p1763_p9)
}
 0x843   :  { %1316 = dma.vmem_to_hbm [thread:$0]  %s1314_s10, 32, %s1969_s6, [#allocation5]  }
 0x844   :  { %1773 = dma.done.wait [#allocation5], 32  }
 0x845   :  { %1774 = vsyncadd [#allocation5], 4294967264 }
 0x846   :  { %1320 = vsyncpa [#allocation4], 1 }
 0x847   :  { %1321 = vsyncpa [#allocation7], 1 }
 0x848   :  { %1322 = vsyncpa [#allocation5], 1 }

</bundles_post_ra>
